<compile_context>
chip_gen: v5e
topology: v5e:2x2
jax: 0.10.0
libtpu: 0.0.40
codegen_flags: <defaults>
</compile_context>

<pallas_src>
import functools

import jax
import jax.numpy as jnp
from jax.experimental import pallas as pl
from jax.experimental.pallas import tpu as pltpu

LANE = 128  # lane width; MXU-friendly on all generations.
# TODO(synk): on v6e/v7x, rounding Hp/Dp_out to 256 (when padding waste is
# small) gives fuller 256-wide MXU pushes; fp8 weights are a further v7x win.


def _round_up(n, m):
    return ((n + m - 1) // m) * m


def _vmem_budget_bytes():
    """(budget, physical): ~75% of VMEM (96 MiB v5e/v6e, 48 MiB v7x/TC)."""
    try:
        phys = int(pltpu.get_tpu_info().vmem_capacity_bytes)
    except Exception:
        phys = 64 * 1024 * 1024  # conservative fallback (v7x per-TC)
    return (phys * 3) // 4, phys


def mlp_kernel(x_ref, w1_ref, b1_ref, w2_ref, b2_ref, out_ref, acc_ref):
    hk = pl.program_id(1)

    @pl.when(hk == 0)
    def _():
        acc_ref[...] = jnp.zeros_like(acc_ref)

    # fc1 chunk: [TB, Dp_in] @ [Dp_in, TH] + [1, TH], ReLU (f32 accumulation).
    h = jnp.dot(x_ref[...], w1_ref[...], preferred_element_type=jnp.float32)
    h = jnp.maximum(h + b1_ref[...], 0.0)
    # fc2 chunk accumulate: [TB, TH] @ [TH, Dp_out] into the f32 accumulator.
    # NOTE: with bf16 weights this cast drops the f32 fc1 result to bf16
    # between the matmuls (documented; exact when weights are f32).
    acc_ref[...] += jnp.dot(h.astype(w2_ref.dtype), w2_ref[...],
                            preferred_element_type=jnp.float32)

    @pl.when(hk == pl.num_programs(1) - 1)
    def _():
        out_ref[...] = (acc_ref[...] + b2_ref[...]).astype(out_ref.dtype)


def pad_params(w1, b1, w2, b2):
    """Zero-pad nn.Linear params ([in, out] layout) to lane-dense shapes.

    Call ONCE at init; re-padding per forward would re-stream both weight
    matrices through HBM on every call.
    """
    D_in, H = w1.shape
    D_out = w2.shape[1]
    Dp_in, Hp, Dp_out = (_round_up(d, LANE) for d in (D_in, H, D_out))

    def _pad2(a, r, c):
        if a.shape == (r, c):
            return a
        return jnp.zeros((r, c), a.dtype).at[:a.shape[0], :a.shape[1]].set(a)

    w1p = _pad2(w1, Dp_in, Hp)
    b1p = _pad2(b1.reshape(1, -1), 1, Hp)
    w2p = _pad2(w2, Hp, Dp_out)
    b2p = _pad2(b2.reshape(1, -1), 1, Dp_out)
    return (w1p, b1p, w2p, b2p), (D_in, H, D_out)


@functools.partial(jax.jit, static_argnames=("dims", "batch_tile", "hidden_block"))
def simple_mlp(x, w1p, b1p, w2p, b2p, *, dims, batch_tile=None, hidden_block=None):
    """x: [B, D_in]; pre-padded params from pad_params; dims=(D_in, H, D_out)."""
    D_in, H, D_out = dims
    B = x.shape[0]
    Dp_in, Hp = w1p.shape
    Dp_out = w2p.shape[1]

    x_item = jnp.dtype(x.dtype).itemsize
    w_item = jnp.dtype(w1p.dtype).itemsize
    b_item = jnp.dtype(b1p.dtype).itemsize

    # Sublane packing: 8 rows for f32, 16 for bf16, 32 for int8/fp8.
    SUB = 8 * max(1, 4 // x_item)

    vmem_budget, phys_vmem = _vmem_budget_bytes()

    # Generation-aware batch tile: bigger tiles amortize per-step overhead and
    # lift DMA efficiency on v5e/v6e's 128 MiB VMEM; 256 on v7x (64 MiB/TC).
    if batch_tile is None:
        batch_tile = 512 if phys_vmem >= 96 * 1024 * 1024 else 256

    TB = min(_round_up(batch_tile, SUB), _round_up(B, SUB))
    Bp = _round_up(B, TB)

    def footprint(tb, th):
        n_h = Hp // th
        wbuf = 1 if n_h == 1 else 2  # Buffered(1) only when weights are resident
        return (2 * tb * Dp_in * x_item                       # x (double-buffered)
                + 2 * tb * Dp_out * x_item                    # out (double-buffered)
                + wbuf * (Dp_in * th + th * Dp_out) * w_item  # w1/w2 chunks
                + wbuf * th * b_item + Dp_out * b_item        # b1 chunk, b2 resident
                + 4 * tb * th                                 # f32 hidden intermediate
                + 4 * tb * Dp_out)                            # f32 accumulator scratch

    # Hidden-dim blocking: largest TH (divisor of Hp, multiple of 128) whose
    # working set fits the budget.  Small models => one resident step.
    if hidden_block is not None:
        TH = int(hidden_block)
        assert TH % LANE == 0 and Hp % TH == 0
    else:
        th_candidates = [k * LANE for k in range(Hp // LANE, 0, -1)
                         if Hp % (k * LANE) == 0]
        TH = th_candidates[-1]
        for cand in th_candidates:
            if footprint(TB, cand) * 3 // 2 <= vmem_budget:
                TH = cand
                break
        # If even TH == 128 doesn't fit, shrink the batch tile instead of
        # silently clamping vmem_limit below the working set.
        while footprint(TB, TH) * 3 // 2 > vmem_budget and TB > SUB:
            TB = max(SUB, _round_up(TB // 2, SUB))
            Bp = _round_up(B, TB)

    n_h = Hp // TH
    resident = n_h == 1

    # Fast path: aligned x streams straight through (no padded HBM copy).
    if (Bp, Dp_in) == (B, D_in):
        xp = x
    else:
        xp = jnp.zeros((Bp, Dp_in), x.dtype).at[:B, :D_in].set(x)

    vmem_needed = footprint(TB, TH)
    vmem_limit = int(min(max(vmem_needed * 3 // 2, 32 * 1024 * 1024), vmem_budget))
    vmem_limit = max(vmem_limit, min(vmem_needed, vmem_budget))

    flops = 2 * Bp * (Dp_in * Hp + Hp * Dp_out)
    bytes_accessed = (x_item * (Bp * Dp_in + Bp * Dp_out)
                      + w_item * (Dp_in * Hp + Hp * Dp_out)
                      + b_item * (Hp + Dp_out))

    def wspec(shape, idx_map, force_resident=False):
        if resident or force_resident:
            return pl.BlockSpec(shape, idx_map, pipeline_mode=pl.Buffered(1))
        return pl.BlockSpec(shape, idx_map)

    out_p = pl.pallas_call(
        mlp_kernel,
        out_shape=jax.ShapeDtypeStruct((Bp, Dp_out), x.dtype),
        grid_spec=pltpu.PrefetchScalarGridSpec(
            num_scalar_prefetch=0,
            grid=(Bp // TB, n_h),
            in_specs=[
                pl.BlockSpec((TB, Dp_in), lambda i, h: (i, 0)),   # x: batch-tiled
                wspec((Dp_in, TH), lambda i, h: (0, h)),          # w1 chunk
                wspec((1, TH), lambda i, h: (0, h)),              # b1 chunk
                wspec((TH, Dp_out), lambda i, h: (h, 0)),         # w2 chunk
                wspec((1, Dp_out), lambda i, h: (0, 0),
                      force_resident=True),                       # b2: resident
            ],
            out_specs=pl.BlockSpec((TB, Dp_out), lambda i, h: (i, 0)),
            scratch_shapes=[pltpu.VMEM((TB, Dp_out), jnp.float32)],
        ),
        compiler_params=pltpu.CompilerParams(
            dimension_semantics=("parallel", "arbitrary"),
            vmem_limit_bytes=vmem_limit,
        ),
        cost_estimate=pl.CostEstimate(
            flops=flops, transcendentals=0, bytes_accessed=bytes_accessed),
    )(xp, w1p, b1p, w2p, b2p)

    # Fast path: aligned output returned directly (no slicing copy).
    if (Bp, Dp_out) == (B, D_out):
        return out_p
    return out_p[:B, :D_out]


def reference_mlp(x, w1, b1, w2, b2):
    h = jnp.maximum(x @ w1 + b1, 0.0)
    return h @ w2 + b2


if __name__ == "__main__":
    key = jax.random.PRNGKey(0)

    # --- Test 1: small shapes consistent with the module's forward ---------
    batch, input_dim, hidden_dim, output_dim = 8, 16, 32, 8
    kx, k1, kb1, k2, kb2 = jax.random.split(key, 5)
    x = jax.random.normal(kx, (batch, input_dim), dtype=jnp.float32)
    w1 = jax.random.normal(k1, (input_dim, hidden_dim), dtype=jnp.float32) * 0.1
    b1 = jax.random.normal(kb1, (hidden_dim,), dtype=jnp.float32) * 0.1
    w2 = jax.random.normal(k2, (hidden_dim, output_dim), dtype=jnp.float32) * 0.1
    b2 = jax.random.normal(kb2, (output_dim,), dtype=jnp.float32) * 0.1

    params, dims = pad_params(w1, b1, w2, b2)   # padded ONCE at init
    out = simple_mlp(x, *params, dims=dims)
    jax.block_until_ready(out)
    ref = reference_mlp(x, w1, b1, w2, b2)
    assert out.shape == (batch, output_dim)
    assert jnp.allclose(out, ref, atol=1e-5, rtol=1e-5)

    # --- Test 2: multi-tile batch grid (batch padding + tiling) ------------
    kx2 = jax.random.fold_in(kx, 1)
    x2 = jax.random.normal(kx2, (200, input_dim), dtype=jnp.float32)
    out2 = simple_mlp(x2, *params, dims=dims, batch_tile=64)
    jax.block_until_ready(out2)
    ref2 = reference_mlp(x2, w1, b1, w2, b2)
    assert out2.shape == (200, output_dim)
    assert jnp.allclose(out2, ref2, atol=1e-5, rtol=1e-5)

    # --- Test 3: aligned fast path + hidden-dim blocking (2 H-steps) -------
    B3, Din3, H3, Dout3 = 256, 128, 256, 128
    k3 = jax.random.fold_in(key, 3)
    ka, kb, kc, kd, ke = jax.random.split(k3, 5)
    x3 = jax.random.normal(ka, (B3, Din3), dtype=jnp.float32)
    w1_3 = jax.random.normal(kb, (Din3, H3), dtype=jnp.float32) * 0.05
    b1_3 = jax.random.normal(kc, (H3,), dtype=jnp.float32) * 0.05
    w2_3 = jax.random.normal(kd, (H3, Dout3), dtype=jnp.float32) * 0.05
    b2_3 = jax.random.normal(ke, (Dout3,), dtype=jnp.float32) * 0.05
    params3, dims3 = pad_params(w1_3, b1_3, w2_3, b2_3)
    out3 = simple_mlp(x3, *params3, dims=dims3, hidden_block=128)
    jax.block_until_ready(out3)
    ref3 = reference_mlp(x3, w1_3, b1_3, w2_3, b2_3)
    assert out3.shape == (B3, Dout3)
    assert jnp.allclose(out3, ref3, atol=1e-4, rtol=1e-4)

    print("KERNEL_OK")
</pallas_src>

<mosaic_0001>
module attributes {stable_mosaic.version = 11 : i64} {
  func.func @mlp_kernel(%arg0: i32, %arg1: i32, %arg2: memref<8x128xf32, #tpu.memory_space<vmem>>, %arg3: memref<128x128xf32, #tpu.memory_space<vmem>>, %arg4: memref<1x128xf32, #tpu.memory_space<vmem>>, %arg5: memref<128x128xf32, #tpu.memory_space<vmem>>, %arg6: memref<1x128xf32, #tpu.memory_space<vmem>>, %arg7: memref<8x128xf32, #tpu.memory_space<vmem>>, %arg8: memref<8x128xf32, #tpu.memory_space<vmem>>) attributes {dimension_semantics = [#tpu.dimension_semantics<parallel>, #tpu.dimension_semantics<arbitrary>], iteration_bounds = array<i64: 1, 1>, scalar_prefetch = 0 : i64, scratch_operands = 1 : i64, tpu.core_type = #tpu.core_type<tc>, window_params = [{transform_indices = @transform_0, window_bounds = array<i64: 8, 128>}, {pipeline_mode = #tpu.pipeline_mode<synchronous>, transform_indices = @transform_1, window_bounds = array<i64: 128, 128>}, {pipeline_mode = #tpu.pipeline_mode<synchronous>, transform_indices = @transform_2, window_bounds = array<i64: 1, 128>}, {pipeline_mode = #tpu.pipeline_mode<synchronous>, transform_indices = @transform_3, window_bounds = array<i64: 128, 128>}, {pipeline_mode = #tpu.pipeline_mode<synchronous>, transform_indices = @transform_4, window_bounds = array<i64: 1, 128>}, {transform_indices = @transform_5, window_bounds = array<i64: 8, 128>}]} {
    %c0_i32 = arith.constant 0 : i32
    %0 = arith.cmpi eq, %arg1, %c0_i32 : i32
    %1 = arith.extui %0 : i1 to i32
    %c0_i32_0 = arith.constant 0 : i32
    %2 = arith.cmpi ne, %1, %c0_i32_0 : i32
    scf.if %2 {
      %cst_16 = arith.constant 0.000000e+00 : f32
      %19 = vector.broadcast %cst_16 : f32 to vector<8x128xf32>
      %c0_17 = arith.constant 0 : index
      %c0_18 = arith.constant 0 : index
      %20 = vector.load %arg8[%c0_17, %c0_18] : memref<8x128xf32, #tpu.memory_space<vmem>>, vector<8x128xf32>
      tpu.vector_store %arg8[%c0_17, %c0_18], %19 {strides = array<i32>} : memref<8x128xf32, #tpu.memory_space<vmem>>, vector<8x128xf32>,
    } else {
    }
    %c0 = arith.constant 0 : index
    %c0_1 = arith.constant 0 : index
    %3 = vector.load %arg2[%c0, %c0_1] : memref<8x128xf32, #tpu.memory_space<vmem>>, vector<8x128xf32>
    %c0_2 = arith.constant 0 : index
    %c0_3 = arith.constant 0 : index
    %4 = vector.load %arg3[%c0_2, %c0_3] : memref<128x128xf32, #tpu.memory_space<vmem>>, vector<128x128xf32>
    %cst = arith.constant dense<0.000000e+00> : vector<8x128xf32>
    %5 = tpu.matmul %3, %4, %cst {dimension_numbers = #tpu.dot_dimension_numbers<[1], [0], [0], [1], [0, 0, 1, 1], [], []>} : vector<8x128xf32>, vector<128x128xf32>, vector<8x128xf32> -> vector<8x128xf32>
    %c0_4 = arith.constant 0 : index
    %c0_5 = arith.constant 0 : index
    %6 = vector.load %arg4[%c0_4, %c0_5] : memref<1x128xf32, #tpu.memory_space<vmem>>, vector<1x128xf32>
    %7 = vector.broadcast %6 : vector<1x128xf32> to vector<8x128xf32>
    %8 = arith.addf %5, %7 : vector<8x128xf32>
    %cst_6 = arith.constant 0.000000e+00 : f32
    %9 = vector.broadcast %cst_6 : f32 to vector<8x128xf32>
    %10 = arith.maximumf %8, %9 : vector<8x128xf32>
    %c0_7 = arith.constant 0 : index
    %c0_8 = arith.constant 0 : index
    %11 = vector.load %arg8[%c0_7, %c0_8] : memref<8x128xf32, #tpu.memory_space<vmem>>, vector<8x128xf32>
    %c0_9 = arith.constant 0 : index
    %c0_10 = arith.constant 0 : index
    %12 = vector.load %arg5[%c0_9, %c0_10] : memref<128x128xf32, #tpu.memory_space<vmem>>, vector<128x128xf32>
    %cst_11 = arith.constant dense<0.000000e+00> : vector<8x128xf32>
    %13 = tpu.matmul %10, %12, %cst_11 {dimension_numbers = #tpu.dot_dimension_numbers<[1], [0], [0], [1], [0, 0, 1, 1], [], []>} : vector<8x128xf32>, vector<128x128xf32>, vector<8x128xf32> -> vector<8x128xf32>
    %14 = arith.addf %11, %13 : vector<8x128xf32>
    %c0_12 = arith.constant 0 : index
    %c0_13 = arith.constant 0 : index
    %15 = vector.load %arg8[%c0_12, %c0_13] : memref<8x128xf32, #tpu.memory_space<vmem>>, vector<8x128xf32>
    tpu.vector_store %arg8[%c0_12, %c0_13], %14 {strides = array<i32>} : memref<8x128xf32, #tpu.memory_space<vmem>>, vector<8x128xf32>,
    %c0_i32_14 = arith.constant 0 : i32
    %16 = arith.cmpi eq, %arg1, %c0_i32_14 : i32
    %17 = arith.extui %16 : i1 to i32
    %c0_i32_15 = arith.constant 0 : i32
    %18 = arith.cmpi ne, %17, %c0_i32_15 : i32
    scf.if %18 {
      %c0_16 = arith.constant 0 : index
      %c0_17 = arith.constant 0 : index
      %19 = vector.load %arg8[%c0_16, %c0_17] : memref<8x128xf32, #tpu.memory_space<vmem>>, vector<8x128xf32>
      %c0_18 = arith.constant 0 : index
      %c0_19 = arith.constant 0 : index
      %20 = vector.load %arg6[%c0_18, %c0_19] : memref<1x128xf32, #tpu.memory_space<vmem>>, vector<1x128xf32>
      %21 = vector.broadcast %20 : vector<1x128xf32> to vector<8x128xf32>
      %22 = arith.addf %19, %21 : vector<8x128xf32>
      %c0_20 = arith.constant 0 : index
      %c0_21 = arith.constant 0 : index
      %23 = vector.load %arg7[%c0_20, %c0_21] : memref<8x128xf32, #tpu.memory_space<vmem>>, vector<8x128xf32>
      tpu.vector_store %arg7[%c0_20, %c0_21], %22 {strides = array<i32>} : memref<8x128xf32, #tpu.memory_space<vmem>>, vector<8x128xf32>,
    } else {
    }
    return
  }
  func.func @transform_0(%arg0: i32, %arg1: i32) -> (i32, i32) {
    %c0_i32 = arith.constant 0 : i32
    %c0_i32_0 = arith.constant 0 : i32
    return %arg0, %c0_i32 : i32, i32
  }
  func.func @transform_1(%arg0: i32, %arg1: i32) -> (i32, i32) {
    %c0_i32 = arith.constant 0 : i32
    %c0_i32_0 = arith.constant 0 : i32
    return %c0_i32, %arg1 : i32, i32
  }
  func.func @transform_2(%arg0: i32, %arg1: i32) -> (i32, i32) {
    %c0_i32 = arith.constant 0 : i32
    %c0_i32_0 = arith.constant 0 : i32
    return %c0_i32, %arg1 : i32, i32
  }
  func.func @transform_3(%arg0: i32, %arg1: i32) -> (i32, i32) {
    %c0_i32 = arith.constant 0 : i32
    %c0_i32_0 = arith.constant 0 : i32
    return %arg1, %c0_i32 : i32, i32
  }
  func.func @transform_4(%arg0: i32, %arg1: i32) -> (i32, i32) {
    %c0_i32 = arith.constant 0 : i32
    %c0_i32_0 = arith.constant 0 : i32
    %c0_i32_1 = arith.constant 0 : i32
    return %c0_i32, %c0_i32_0 : i32, i32
  }
  func.func @transform_5(%arg0: i32, %arg1: i32) -> (i32, i32) {
    %c0_i32 = arith.constant 0 : i32
    %c0_i32_0 = arith.constant 0 : i32
    return %arg0, %c0_i32 : i32, i32
  }
}

</mosaic_0001>

<bundles_post_ra>
// kernel: simple_mlp.1
= control target key start
LH: loop header
LB: loop body
LE: loop exit
PB: predicated region body
PF: predicated region fallthrough
CT: control target
= control target key end

     0   :  { %10 = vsyncpa [#allocation4], 0  ;;  %s305_s0 = inlined_call_operand.vmem [shape: f32[8,128], index: 0, kind: input, shape index: {}]   ;;  %s306_s1 = inlined_call_operand.hbm [shape: f32[128,128], index: 1, kind: input, shape index: {}]   ;;  %s307_s2 = inlined_call_operand.vmem [shape: f32[1,128], index: 2, kind: input, shape index: {}]   ;;  %s308_s3 = inlined_call_operand.hbm [shape: f32[128,128], index: 3, kind: input, shape index: {}]   ;;  %s309_s4 = inlined_call_operand.vmem [shape: f32[1,128], index: 4, kind: input, shape index: {}]   ;;  %s310_s5 = inlined_call_operand.hbm [shape: f32[8,128], index: 5, kind: output, shape index: {}]  }
   0x1   :  { %11 = vsyncpa [#allocation7], 0 }
   0x2   :  { %12 = vsyncpa [#allocation5], 0  ;;  %s19_s20 = sshll.u32 %s306_s1, 4  ;;  %s252_s21 = smov [#allocation3]   ;;  %s20_s20 = int_to_ptr.hbm [resolvable:$true] %s19_s20 }
   0x3   :  { %s21_s22 = sshll.u32 %s252_s21, 4  ;;  %s34_s25 = sshll.u32 %s308_s3, 4  ;;  %s22_s22 = int_to_ptr.vmem [resolvable:$true] %s21_s22  ;;  %s35_s25 = int_to_ptr.hbm [resolvable:$true] %s34_s25 }
   0x4   :  { %s253_s26 = smov 128   ;;  %s254_s27 = smov 8  }
   0x5   :  { %27 = dma.hbm_to_vmem [thread:$0]  %s20_s20, 2048, %s22_s22, [#allocation4], %s253_s26, %s253_s26, %s254_s27  }
   0x6   :  { %s255_s28 = smov [#allocation6]  }
   0x7   :  { %s36_s29 = sshll.u32 %s255_s28, 4  ;;  %s37_s29 = int_to_ptr.vmem [resolvable:$true] %s36_s29 }
   0x8   :  { %42 = dma.hbm_to_vmem [thread:$0]  %s35_s25, 2048, %s37_s29, [#allocation7], %s253_s26, %s253_s26, %s254_s27  }
   0x9   :  { %246 = dma.done.wait [#allocation4], 2048  }
   0xa   :  { %247 = vsyncadd [#allocation4], 4294965248 }
   0xb   :  { %248 = dma.done.wait [#allocation7], 2048  }
   0xc   :  { %249 = vsyncadd [#allocation7], 4294965248  ;;  %v74_v0 = vld [vmem:[#allocation3 + $0x78] sm:$0xff]  ;;  %v73_v1 = vld [vmem:[#allocation3 + $0x70] sm:$0xff]  ;;  %s156_s12 = sshll.u32 %s310_s5, 4  ;;  %s157_s12 = int_to_ptr.hbm [resolvable:$true] %s156_s12 }
   0xd   :  { %79 = vmatpush.msra.mxu0 %v74_v0  ;;  %v72_v2 = vld [vmem:[#allocation3 + $0x68] sm:$0xff]  ;;  %v71_v3 = vld [vmem:[#allocation3 + $0x60] sm:$0xff]  ;;  %v116_v4 = vld [vmem:[#allocation6 + $0x78] sm:$0xff] }
   0xe   :  { %v70_v5 = vld [vmem:[#allocation3 + $0x58] sm:$0xff]  ;;  %117 = vmatpush.msra.mxu1 %v116_v4  ;;  %v115_v6 = vld [vmem:[#allocation6 + $0x70] sm:$0xff]  ;;  %v114_v7 = vld [vmem:[#allocation6 + $0x68] sm:$0xff] }
   0xf   :  { %80 = vmatpush.msra.mxu0 %v73_v1  ;;  %v69_v8 = vld [vmem:[#allocation3 + $0x50] sm:$0xff]  ;;  %v113_v9 = vld [vmem:[#allocation6 + $0x60] sm:$0xff]  ;;  %v68_v10 = vld [vmem:[#allocation3 + $0x48] sm:$0xff] }
  0x10   :  { %118 = vmatpush.msra.mxu1 %v115_v6  ;;  %v112_v11 = vld [vmem:[#allocation6 + $0x58] sm:$0xff]  ;;  %v67_v12 = vld [vmem:[#allocation3 + $0x40] sm:$0xff]  ;;  %v111_v13 = vld [vmem:[#allocation6 + $0x50] sm:$0xff] }
  0x11   :  { %81 = vmatpush.msra.mxu0 %v72_v2  ;;  %v66_v14 = vld [vmem:[#allocation3 + $0x38] sm:$0xff]  ;;  %v110_v15 = vld [vmem:[#allocation6 + $0x48] sm:$0xff]  ;;  %v65_v16 = vld [vmem:[#allocation3 + $0x30] sm:$0xff] }
  0x12   :  { %119 = vmatpush.msra.mxu1 %v114_v7  ;;  %v109_v17 = vld [vmem:[#allocation6 + $0x40] sm:$0xff]  ;;  %v64_v18 = vld [vmem:[#allocation3 + $0x28] sm:$0xff]  ;;  %v108_v19 = vld [vmem:[#allocation6 + $0x38] sm:$0xff] }
  0x13   :  { %82 = vmatpush.msra.mxu0 %v71_v3  ;;  %v63_v20 = vld [vmem:[#allocation3 + $0x20] sm:$0xff]  ;;  %v107_v21 = vld [vmem:[#allocation6 + $0x30] sm:$0xff]  ;;  %v62_v22 = vld [vmem:[#allocation3 + $0x18] sm:$0xff] }
  0x14   :  { %120 = vmatpush.msra.mxu1 %v113_v9  ;;  %v106_v23 = vld [vmem:[#allocation6 + $0x28] sm:$0xff]  ;;  %v61_v24 = vld [vmem:[#allocation3 + $0x10] sm:$0xff]  ;;  %v105_v25 = vld [vmem:[#allocation6 + $0x20] sm:$0xff] }
  0x15   :  { %83 = vmatpush.msra.mxu0 %v70_v5  ;;  %v60_v26 = vld [vmem:[#allocation3 + $0x8] sm:$0xff]  ;;  %v104_v27 = vld [vmem:[#allocation6 + $0x18] sm:$0xff]  ;;  %v59_v28 = vld [vmem:[#allocation3] sm:$0xff] }
  0x16   :  { %121 = vmatpush.msra.mxu1 %v112_v11  ;;  %v58_v29 = vld [vmem:[%s305_s0] sm:$0xff]  ;;  %v103_v30 = vld [vmem:[#allocation6 + $0x10] sm:$0xff]  ;;  %v102_v31 = vld [vmem:[#allocation6 + $0x8] sm:$0xff]  ;;  %s256_s0 = smov [#allocation8]  }
  0x17   :  { %84 = vmatpush.msra.mxu0 %v69_v8  ;;  %v101_v32 = vld [vmem:[#allocation6] sm:$0xff]  ;;  %s154_s9 = sshll.u32 %s256_s0, 4  ;;  %s155_s9 = int_to_ptr.vmem [resolvable:$true] %s154_s9 }
  0x18   :  { %122 = vmatpush.msra.mxu1 %v111_v13  ;;  %v172_v33 = vld [vmem:[%s307_s2] ss:$0 sm:$0xff] }
  0x19   :  { %85 = vmatpush.msra.mxu0 %v68_v10  ;;  %v173_v37 = vld [vmem:[%s309_s4] ss:$0 sm:$0xff] }
  0x1a   :  { %123 = vmatpush.msra.mxu1 %v110_v15 }
  0x1b   :  { %86 = vmatpush.msra.mxu0 %v67_v12 }
  0x1c   :  { %124 = vmatpush.msra.mxu1 %v109_v17 }
  0x1d   :  { %87 = vmatpush.msra.mxu0 %v66_v14 }
  0x1e   :  { %125 = vmatpush.msra.mxu1 %v108_v19 }
  0x1f   :  { %88 = vmatpush.msra.mxu0 %v65_v16 }
  0x20   :  { %126 = vmatpush.msra.mxu1 %v107_v21 }
  0x21   :  { %89 = vmatpush.msra.mxu0 %v64_v18 }
  0x22   :  { %127 = vmatpush.msra.mxu1 %v106_v23 }
  0x23   :  { %90 = vmatpush.msra.mxu0 %v63_v20 }
  0x24   :  { %128 = vmatpush.msra.mxu1 %v105_v25 }
  0x25   :  { %91 = vmatpush.msra.mxu0 %v62_v22 }
  0x26   :  { %129 = vmatpush.msra.mxu1 %v104_v27 }
  0x27   :  { %92 = vmatpush.msra.mxu0 %v61_v24 }
  0x28   :  { %130 = vmatpush.msra.mxu1 %v103_v30 }
  0x29   :  { %93 = vmatpush.msra.mxu0 %v60_v26 }
  0x2a   :  { %131 = vmatpush.msra.mxu1 %v102_v31 }
  0x2b   :  { %94 = vmatpush.msra.mxu0 %v59_v28 }
  0x2c   :  { %95 = vmatmul.f32.vlgmr.msra.gmra.mxu0 %v58_v29  ;;  %132 = vmatpush.msra.mxu1 %v101_v32 }
  0xa9   :  { %v96_v34 = vpop.f32.mrf.mxu0 }
  0xaa   :  { %v97_v35 = vadd.f32 %v172_v33, %v96_v34 }
  0xac   :  { %v99_v36 = vmax.f32 %v97_v35, 0.0 }
  0xae   :  { %133 = vmatmul.f32.vlgmr.msra.gmra.mxu1 %v99_v36 }
 0x12b   :  { %v134_v38 = vpop.f32.mrf.mxu1 }
 0x12c   :  { %v147_v39 = vadd.f32 %v173_v37, %v134_v38 }
 0x12e   :  { %148 = vst [vmem:[#allocation8] sm:$0xff] %v147_v39 }
 0x12f   :  { %159 = dma.vmem_to_hbm [thread:$0]  %s155_s9, 128, %s157_s12, [#allocation5]  }
 0x130   :  { %250 = dma.done.wait [#allocation5], 128  }
 0x131   :  { %251 = vsyncadd [#allocation5], 4294967168 }
 0x132   :  { %164 = vsyncpa [#allocation4], 1 }
 0x133   :  { %165 = vsyncpa [#allocation7], 1 }
 0x134   :  { %166 = vsyncpa [#allocation5], 1 }

</bundles_post_ra>
